<compile_context>
chip_gen: v6e
topology: v6e:2x2x1
jax: 0.10.0
libtpu: 0.0.40
codegen_flags: <defaults>
</compile_context>

<pallas_src>
import functools

import jax
import jax.numpy as jnp
from jax.experimental import pallas as pl
from jax.experimental.pallas import tpu as pltpu


def _round_up(x: int, m: int) -> int:
    return (x + m - 1) // m * m


# ---------------------------------------------------------------------------
# Kernels
# ---------------------------------------------------------------------------
def _linear_resident_kernel(x_ref, w_ref, b_ref, o_ref):
    """Weight-resident path: one (TM, TN) output tile per grid step.

    x_ref: (TM, K)   w_ref: (K, TN)   b_ref: (1, TN)   o_ref: (TM, TN)
    W / bias have M-invariant index maps -> fetched from HBM once and held.
    """
    o_ref[...] = (
        jnp.dot(x_ref[...], w_ref[...], preferred_element_type=jnp.float32)
        + b_ref[...]
    ).astype(o_ref.dtype)


def _linear_ktiled_kernel(x_ref, w_ref, b_ref, o_ref, *scratch):
    """K-tiled fallback (very large F): accumulate over the trailing K axis.

    x_ref: (TM, TK)  w_ref: (TK, TN)  b_ref: (1, TN)  o_ref: (TM, TN)
    scratch: () when the output dtype is f32 (accumulate directly in o_ref),
             else one (TM, TN) f32 VMEM accumulator.
    """
    acc_ref = scratch[0] if scratch else o_ref
    k = pl.program_id(2)

    @pl.when(k == 0)
    def _init():
        acc_ref[...] = jnp.zeros_like(acc_ref)

    acc_ref[...] += jnp.dot(
        x_ref[...], w_ref[...], preferred_element_type=jnp.float32
    )

    @pl.when(k == pl.num_programs(2) - 1)
    def _finalize():
        o_ref[...] = (acc_ref[...] + b_ref[...]).astype(o_ref.dtype)


# ---------------------------------------------------------------------------
# Wrapper
# ---------------------------------------------------------------------------
def dummy_model_forward(x, weight, bias, src_key_padding_mask=None, *,
                        compute_dtype=jnp.bfloat16):
    """Equivalent of DummyModel.forward: y = x @ W.T + b.

    x:      (..., F)  float
    weight: (F, F)    (PyTorch convention: out_features x in_features)
    bias:   (F,)
    compute_dtype: MXU operand dtype (default bf16; None -> x.dtype, exact).
                   Accumulation and the bias add are always f32.
    """
    orig_shape = x.shape
    out_dtype = x.dtype
    F = orig_shape[-1]
    x2d = x.reshape(-1, F)
    M = x2d.shape[0]

    if compute_dtype is None:
        compute_dtype = out_dtype
    op_bytes = jnp.dtype(compute_dtype).itemsize
    out_bytes = jnp.dtype(out_dtype).itemsize
    f32_out = jnp.dtype(out_dtype) == jnp.dtype(jnp.float32)
    sublane = max(8, 32 // op_bytes)        # 8 f32 / 16 bf16 / 32 int8-fp8

    # ---- per-generation VMEM budget (64 MiB v7x, 128 MiB v5e/v6e) ----
    try:
        vmem_cap = int(pltpu.get_tpu_info().vmem_capacity_bytes)
    except Exception:
        vmem_cap = 64 * 1024 * 1024          # conservative (v7x) fallback
    vmem_budget = int(vmem_cap * 0.75)       # tiles target ~75% of VMEM
    vmem_limit = min(int(vmem_cap * 0.85), vmem_cap - 6 * 1024 * 1024)

    # Lane-dense padding targets (zero padding is exact for a linear layer).
    K0 = _round_up(F, 128)
    N0 = _round_up(F, 128)

    # ---- choose tiling: weight-resident if it fits, else K-tiled ----
    w_resident_bytes = 2 * K0 * N0 * op_bytes + 2 * N0 * 4   # W + bias

    def _m_tile_bytes(tm):                                   # x + out (dbl-buf)
        return 2 * tm * K0 * op_bytes + 2 * tm * N0 * out_bytes

    resident = w_resident_bytes + _m_tile_bytes(sublane) <= vmem_budget

    if resident:
        TK, TN = K0, N0
        K_pad, N_pad = K0, N0
        TM = sublane
        for cand in (1024, 512, 256, 128, 64, 32, 16, 8):
            if cand < sublane:
                continue
            if w_resident_bytes + _m_tile_bytes(cand) <= vmem_budget:
                TM = cand
                break
        TM = min(TM, _round_up(M, sublane))
        # v7x megacore: prefer >=2 M blocks when each half-tile is still big.
        if _round_up(M, TM) // TM < 2:
            tm_half = _round_up((M + 1) // 2, sublane)
            if tm_half >= 128:
                TM = tm_half
    else:
        TM = min(512, _round_up(M, sublane))
        TN = min(2048, N0)
        TK = min(2048, K0)

        def _tiled_bytes(tm, tn, tk):
            acc = 0 if f32_out else tm * tn * 4
            return (2 * tm * tk * op_bytes + 2 * tk * tn * op_bytes
                    + 2 * tn * 4 + 2 * tm * tn * out_bytes + acc)

        while _tiled_bytes(TM, TN, TK) > vmem_budget and TK > 512:
            TK = max(512, TK // 2)
        while _tiled_bytes(TM, TN, TK) > vmem_budget and TN > 512:
            TN = max(512, TN // 2)
        while _tiled_bytes(TM, TN, TK) > vmem_budget and TM > sublane:
            TM = max(sublane, _round_up(TM // 2, sublane))
        K_pad = _round_up(F, TK)
        N_pad = _round_up(F, TN)

    M_pad = _round_up(M, TM)

    # ---- pad / cast only when actually needed (no-op when aligned) ----
    x_p = x2d
    if M_pad != M or K_pad != F:
        x_p = jnp.pad(x2d, ((0, M_pad - M), (0, K_pad - F)))
    if x_p.dtype != compute_dtype:
        x_p = x_p.astype(compute_dtype)

    w_t = weight.T               # (K, N); one-time F^2 op, amortized over M
    if K_pad != F or N_pad != F:
        w_t = jnp.pad(w_t, ((0, K_pad - F), (0, N_pad - F)))
    if w_t.dtype != compute_dtype:
        w_t = w_t.astype(compute_dtype)

    b_p = bias if N_pad == F else jnp.pad(bias, (0, N_pad - F))
    b_p = b_p.reshape(1, N_pad).astype(jnp.float32)

    if resident:
        grid = (M_pad // TM, N_pad // TN)            # usually (m_tiles, 1)
        cost = pl.CostEstimate(
            flops=2 * M_pad * N_pad * K_pad,
            transcendentals=0,
            bytes_accessed=(M_pad * K_pad * op_bytes       # x: single pass
                            + K_pad * N_pad * op_bytes     # W: fetched once
                            + N_pad * 4
                            + M_pad * N_pad * out_bytes),
        )
        out = pl.pallas_call(
            _linear_resident_kernel,
            out_shape=jax.ShapeDtypeStruct((M_pad, N_pad), out_dtype),
            grid_spec=pltpu.PrefetchScalarGridSpec(
                num_scalar_prefetch=0,
                grid=grid,
                in_specs=[
                    pl.BlockSpec((TM, TK), lambda i, j: (i, 0)),   # x
                    pl.BlockSpec((TK, TN), lambda i, j: (0, j)),   # W (resident)
                    pl.BlockSpec((1, TN), lambda i, j: (0, j)),    # bias
                ],
                out_specs=pl.BlockSpec((TM, TN), lambda i, j: (i, j)),
            ),
            compiler_params=pltpu.CompilerParams(
                dimension_semantics=("parallel", "parallel"),
                vmem_limit_bytes=vmem_limit,
            ),
            cost_estimate=cost,
        )(x_p, w_t, b_p)
    else:
        grid = (M_pad // TM, N_pad // TN, K_pad // TK)
        n_passes_x = N_pad // TN
        n_passes_w = M_pad // TM
        cost = pl.CostEstimate(
            flops=2 * M_pad * N_pad * K_pad,
            transcendentals=0,
            bytes_accessed=(n_passes_x * M_pad * K_pad * op_bytes
                            + n_passes_w * K_pad * N_pad * op_bytes
                            + n_passes_w * N_pad * 4
                            + M_pad * N_pad * out_bytes),
        )
        scratch_shapes = [] if f32_out else [pltpu.VMEM((TM, TN), jnp.float32)]
        out = pl.pallas_call(
            _linear_ktiled_kernel,
            out_shape=jax.ShapeDtypeStruct((M_pad, N_pad), out_dtype),
            grid_spec=pltpu.PrefetchScalarGridSpec(
                num_scalar_prefetch=0,
                grid=grid,
                in_specs=[
                    pl.BlockSpec((TM, TK), lambda i, j, k: (i, k)),  # x
                    pl.BlockSpec((TK, TN), lambda i, j, k: (k, j)),  # W
                    pl.BlockSpec((1, TN), lambda i, j, k: (0, j)),   # bias
                ],
                out_specs=pl.BlockSpec((TM, TN), lambda i, j, k: (i, j)),
                scratch_shapes=scratch_shapes,
            ),
            compiler_params=pltpu.CompilerParams(
                dimension_semantics=("parallel", "parallel", "arbitrary"),
                vmem_limit_bytes=vmem_limit,
            ),
            cost_estimate=cost,
        )(x_p, w_t, b_p)

    if M_pad != M or N_pad != F:
        out = out[:M, :F]
    return out.reshape(orig_shape)


if __name__ == "__main__":
    n_features = 6
    batch, seq = 2, 8

    key = jax.random.PRNGKey(0)
    kx, kw, kb = jax.random.split(key, 3)

    # Deterministic init mimicking nn.Linear's uniform(-1/sqrt(F), 1/sqrt(F)).
    bound = 1.0 / jnp.sqrt(jnp.float32(n_features))
    weight = jax.random.uniform(
        kw, (n_features, n_features), jnp.float32, minval=-bound, maxval=bound
    )
    bias = jax.random.uniform(
        kb, (n_features,), jnp.float32, minval=-bound, maxval=bound
    )
    x = jax.random.normal(kx, (batch, seq, n_features), jnp.float32)

    y_ref = jnp.dot(x, weight.T, precision=jax.lax.Precision.HIGHEST) + bias

    # Default path: bf16 MXU operands, f32 accumulation + f32 bias add.
    fwd = jax.jit(dummy_model_forward)
    y = fwd(x, weight, bias)
    jax.block_until_ready(y)
    assert y.shape == (batch, seq, n_features)
    assert jnp.allclose(y, y_ref, atol=2e-2, rtol=2e-2)

    # Exact f32 path — matches the PyTorch module's numerics.
    fwd_f32 = jax.jit(functools.partial(dummy_model_forward, compute_dtype=None))
    y32 = fwd_f32(x, weight, bias)
    jax.block_until_ready(y32)
    assert jnp.allclose(y32, y_ref, atol=1e-5, rtol=1e-5)

    # Aligned-shape path: no wrapper pad/slice, 2 M-blocks for v7x megacore.
    F2, M2 = 128, 256
    k2x, k2w, k2b = jax.random.split(jax.random.PRNGKey(1), 3)
    w2 = jax.random.normal(k2w, (F2, F2), jnp.float32) * 0.05
    b2 = jax.random.normal(k2b, (F2,), jnp.float32) * 0.05
    x2 = jax.random.normal(k2x, (2, M2 // 2, F2), jnp.float32)
    y2 = fwd_f32(x2, w2, b2)
    jax.block_until_ready(y2)
    y2_ref = jnp.dot(x2, w2.T, precision=jax.lax.Precision.HIGHEST) + b2
    assert y2.shape == (2, M2 // 2, F2)
    assert jnp.allclose(y2, y2_ref, atol=1e-3, rtol=1e-3)

    print("KERNEL_OK")
</pallas_src>

<mosaic_0001>
module attributes {stable_mosaic.version = 11 : i64} {
  func.func @_linear_resident_kernel(%arg0: i32, %arg1: i32, %arg2: memref<16x128xbf16, #tpu.memory_space<vmem>>, %arg3: memref<128x128xbf16, #tpu.memory_space<vmem>>, %arg4: memref<1x128xf32, #tpu.memory_space<vmem>>, %arg5: memref<16x128xf32, #tpu.memory_space<vmem>>) attributes {dimension_semantics = [#tpu.dimension_semantics<parallel>, #tpu.dimension_semantics<parallel>], iteration_bounds = array<i64: 1, 1>, scalar_prefetch = 0 : i64, scratch_operands = 0 : i64, tpu.core_type = #tpu.core_type<tc>, window_params = [{transform_indices = @transform_0, window_bounds = array<i64: 16, 128>}, {transform_indices = @transform_1, window_bounds = array<i64: 128, 128>}, {transform_indices = @transform_2, window_bounds = array<i64: 1, 128>}, {transform_indices = @transform_3, window_bounds = array<i64: 16, 128>}]} {
    %c0 = arith.constant 0 : index
    %c0_0 = arith.constant 0 : index
    %0 = vector.load %arg2[%c0, %c0_0] : memref<16x128xbf16, #tpu.memory_space<vmem>>, vector<16x128xbf16>
    %c0_1 = arith.constant 0 : index
    %c0_2 = arith.constant 0 : index
    %1 = vector.load %arg3[%c0_1, %c0_2] : memref<128x128xbf16, #tpu.memory_space<vmem>>, vector<128x128xbf16>
    %cst = arith.constant dense<0.000000e+00> : vector<16x128xf32>
    %2 = tpu.matmul %0, %1, %cst {dimension_numbers = #tpu.dot_dimension_numbers<[1], [0], [0], [1], [0, 0, 1, 1], [], []>} : vector<16x128xbf16>, vector<128x128xbf16>, vector<16x128xf32> -> vector<16x128xf32>
    %c0_3 = arith.constant 0 : index
    %c0_4 = arith.constant 0 : index
    %3 = vector.load %arg4[%c0_3, %c0_4] : memref<1x128xf32, #tpu.memory_space<vmem>>, vector<1x128xf32>
    %4 = vector.broadcast %3 : vector<1x128xf32> to vector<16x128xf32>
    %5 = arith.addf %2, %4 : vector<16x128xf32>
    %c0_5 = arith.constant 0 : index
    %c0_6 = arith.constant 0 : index
    %6 = vector.load %arg5[%c0_5, %c0_6] : memref<16x128xf32, #tpu.memory_space<vmem>>, vector<16x128xf32>
    tpu.vector_store %arg5[%c0_5, %c0_6], %5 {strides = array<i32>} : memref<16x128xf32, #tpu.memory_space<vmem>>, vector<16x128xf32>,
    return
  }
  func.func @transform_0(%arg0: i32, %arg1: i32) -> (i32, i32) {
    %c0_i32 = arith.constant 0 : i32
    %c0_i32_0 = arith.constant 0 : i32
    return %arg0, %c0_i32 : i32, i32
  }
  func.func @transform_1(%arg0: i32, %arg1: i32) -> (i32, i32) {
    %c0_i32 = arith.constant 0 : i32
    %c0_i32_0 = arith.constant 0 : i32
    return %c0_i32, %arg1 : i32, i32
  }
  func.func @transform_2(%arg0: i32, %arg1: i32) -> (i32, i32) {
    %c0_i32 = arith.constant 0 : i32
    %c0_i32_0 = arith.constant 0 : i32
    return %c0_i32, %arg1 : i32, i32
  }
  func.func @transform_3(%arg0: i32, %arg1: i32) -> (i32, i32) {
    %c0_i32 = arith.constant 0 : i32
    return %arg0, %arg1 : i32, i32
  }
}

</mosaic_0001>

<bundles_post_ra>
// kernel: dummy_model_forward.1
= control target key start
LH: loop header
LB: loop body
LE: loop exit
PB: predicated region body
PF: predicated region fallthrough
CT: control target
= control target key end

     0   :  { %v191_v0 = vmov 0.0   ;;  %vm192_vm0 = vmmov 0   ;;  %s249_s1 = inlined_call_operand.vmem [shape: bf16[128,128], index: 1, kind: input, shape index: {}]   ;;  %s250_s0 = inlined_call_operand.vmem [shape: bf16[16,128], index: 0, kind: input, shape index: {}]   ;;  %s251_s2 = inlined_call_operand.vmem [shape: f32[1,128], index: 2, kind: input, shape index: {}]   ;;  %s252_s3 = inlined_call_operand.vmem [shape: f32[16,128], index: 3, kind: output, shape index: {}]  }
   0x1   :  { %160 = vmatprep.subr.bf16.mxu0 %v191_v0  ;;  %v182_v1 = vld [vmem:[%s249_s1 + $0x38] sm:$0xff]   ;;  %176 = vmatprep.mubr.msk.bf16.mxu0 %vm192_vm0, %v191_v0  ;;  %v183_v2 = vld [vmem:[%s249_s1 + $0x30] sm:$0xff]   ;;  %v184_v3 = vld [vmem:[%s249_s1 + $0x28] sm:$0xff]  }
   0x2   :  { %161 = vmatpush3.bf16.msra.mxu0 %v182_v1  ;;  %v185_v4 = vld [vmem:[%s249_s1 + $0x20] sm:$0xff]   ;;  %v186_v5 = vld [vmem:[%s249_s1 + $0x18] sm:$0xff]   ;;  %v187_v6 = vld [vmem:[%s249_s1 + $0x10] sm:$0xff]  }
   0x3   :  { %162 = vmatprep.subr.bf16.mxu0 %v191_v0  ;;  %v188_v7 = vld [vmem:[%s249_s1 + $0x8] sm:$0xff]   ;;  %v189_v8 = vld [vmem:[%s249_s1] sm:$0xff]  }
   0x4   :  { %v190_v9 = vld [vmem:[%s250_s0] sm:$0xff]  }
   0x5   :  { %v141_v10 = vld [vmem:[%s251_s2] ss:$0 sm:$0xff] }
   0x6   :  { %163 = vmatpush3.bf16.msra.mxu0 %v183_v2 }
   0x7   :  { %164 = vmatprep.subr.bf16.mxu0 %v191_v0 }
   0xa   :  { %165 = vmatpush3.bf16.msra.mxu0 %v184_v3 }
   0xb   :  { %166 = vmatprep.subr.bf16.mxu0 %v191_v0 }
   0xe   :  { %167 = vmatpush3.bf16.msra.mxu0 %v185_v4 }
   0xf   :  { %168 = vmatprep.subr.bf16.mxu0 %v191_v0 }
  0x12   :  { %169 = vmatpush3.bf16.msra.mxu0 %v186_v5 }
  0x13   :  { %170 = vmatprep.subr.bf16.mxu0 %v191_v0 }
  0x16   :  { %171 = vmatpush3.bf16.msra.mxu0 %v187_v6 }
  0x17   :  { %172 = vmatprep.subr.bf16.mxu0 %v191_v0 }
  0x1a   :  { %173 = vmatpush3.bf16.msra.mxu0 %v188_v7 }
  0x1b   :  { %174 = vmatprep.subr.bf16.mxu0 %v191_v0 }
  0x1e   :  { %175 = vmatpush3.bf16.msra.mxu0 %v189_v8 }
  0x21   :  { %177 = vmatmul.mubr.bf16.vlgmr.msra.gmra.mxu0 %v190_v9 }
  0xe1   :  { %v128_v11 = vpop.f32.mrf.mxu0 }
  0xe2   :  { %v129_v12 = vadd.f32 %v141_v10, %v128_v11 }
  0xe3   :  { %v178_v13 = vpop.f32.mrf.mxu0 }
  0xe4   :  { %135 = vst [vmem:[%s252_s3] sm:$0xff] %v129_v12 }
  0xe5   :  { %v131_v14 = vpop.f32.mrf.mxu0 }
  0xe6   :  { %v132_v15 = vadd.f32 %v141_v10, %v131_v14 }
  0xe7   :  { %v179_v16 = vpop.f32.mrf.mxu0 }
  0xe8   :  { %136 = vst [vmem:[%s252_s3 + $0x8] sm:$0xff] %v132_v15 }

</bundles_post_ra>
